<compile_context>
chip_gen: v7x
topology: tpu7x:2x2x1
jax: 0.10.0
libtpu: 0.0.40
codegen_flags: <defaults>
</compile_context>

<pallas_src>
import jax
import jax.numpy as jnp
from jax.experimental import pallas as pl
from jax.experimental.pallas import tpu as pltpu


_DEFAULT_CHUNK_BYTES = 8 * 1024 * 1024   # per-DMA chunk target (HBM->HBM, no VMEM cost)
_MAX_STATIC_CHUNKS = 16                  # cap on trace-time-unrolled DMA issues


def _build_chunks(shape, itemsize, chunk_bytes):
    """Static (start_row, n_rows) chunks along axis 0, or None => one whole-array DMA."""
    if len(shape) == 0 or shape[0] < 2:
        return None
    rows = shape[0]
    row_bytes = itemsize
    for d in shape[1:]:
        row_bytes *= d
    if rows * row_bytes <= chunk_bytes:
        return None
    chunk_rows = max(1, chunk_bytes // max(1, row_bytes))
    if pl.cdiv(rows, chunk_rows) > _MAX_STATIC_CHUNKS:
        chunk_rows = pl.cdiv(rows, _MAX_STATIC_CHUNKS)
    chunks, start = [], 0
    while start < rows:
        size = min(chunk_rows, rows - start)
        chunks.append((start, size))
        start += size
    return chunks


def _make_copy_kernel(chunks):
    """HBM->HBM copy kernel; chunks are static row windows along axis 0."""

    def kernel(x_hbm, o_hbm, sem):
        if chunks is None:
            # Single whole-array DMA: one descriptor, HBM-roofline bound.
            cp = pltpu.make_async_copy(x_hbm, o_hbm, sem.at[0])
            cp.start()
            cp.wait()
            return

        # Chunked, double-buffered issue/wait with 2 DMA semaphores:
        # keep at most two DMAs in flight to hide per-descriptor issue latency.
        inflight = []
        for idx, (start, size) in enumerate(chunks):
            cp = pltpu.make_async_copy(
                x_hbm.at[pl.ds(start, size)],
                o_hbm.at[pl.ds(start, size)],
                sem.at[idx % 2],
            )
            cp.start()
            inflight.append(cp)
            if idx >= 1:
                inflight[idx - 1].wait()
        inflight[-1].wait()

    return kernel


def dummy_projector(x: jax.Array, *, materialize_copy: bool = False,
                    chunk_bytes: int = _DEFAULT_CHUNK_BYTES) -> jax.Array:
    """Identity forward pass of DummyProjector.

    Default: return the input unchanged (no kernel launch — strictly free).
    materialize_copy=True: produce a fresh HBM buffer via a chunked HBM->HBM
    DMA Pallas kernel (no VMEM round-trip, no TensorCore work).
    """
    if not materialize_copy:
        return x
    if x.ndim == 0 or x.size == 0:
        # DMA of a 0-d/empty buffer is pointless; identity semantics preserved.
        return x

    chunks = _build_chunks(x.shape, x.dtype.itemsize, chunk_bytes)
    kernel = _make_copy_kernel(chunks)

    return pl.pallas_call(
        kernel,
        out_shape=jax.ShapeDtypeStruct(x.shape, x.dtype),
        in_specs=[pl.BlockSpec(memory_space=pl.ANY)],
        out_specs=pl.BlockSpec(memory_space=pl.ANY),
        scratch_shapes=[pltpu.SemaphoreType.DMA((2,))],
    )(x)


if __name__ == "__main__":
    key = jax.random.PRNGKey(0)

    # Primary shape: in_dim property implies feature dim 256.
    B, S, D = 2, 8, 256
    x = jax.random.normal(key, (B, S, D), dtype=jnp.float32)

    # Default path: pure identity, no kernel launch.
    y0 = dummy_projector(x)
    jax.block_until_ready(y0)
    assert y0.shape == x.shape and y0.dtype == x.dtype
    assert bool(jnp.all(y0 == x))

    # Materialized copy path: single whole-array HBM->HBM DMA.
    y1 = dummy_projector(x, materialize_copy=True)
    jax.block_until_ready(y1)
    assert y1.shape == x.shape and y1.dtype == x.dtype
    assert bool(jnp.all(y1 == x))

    # Non-128-multiple feature dim + bf16: DMA path has no layout constraints.
    x2 = jax.random.normal(jax.random.PRNGKey(1), (3, 5, 200), dtype=jnp.bfloat16)
    y2 = dummy_projector(x2, materialize_copy=True)
    jax.block_until_ready(y2)
    assert y2.shape == x2.shape and y2.dtype == x2.dtype
    assert bool(jnp.all(y2 == x2))

    # Force the chunked, double-buffered DMA path (ragged tail chunk included)
    # with a tiny chunk_bytes so it is exercised at small shapes.
    x3 = jax.random.normal(jax.random.PRNGKey(2), (70, 256), dtype=jnp.float32)
    y3 = dummy_projector(x3, materialize_copy=True, chunk_bytes=16 * 1024)
    jax.block_until_ready(y3)
    assert y3.shape == x3.shape and y3.dtype == x3.dtype
    assert bool(jnp.all(y3 == x3))

    print("KERNEL_OK")
</pallas_src>

<mosaic_0001>
module attributes {stable_mosaic.version = 11 : i64} {
  func.func @kernel(%arg0: memref<2x8x256xf32, #tpu.memory_space<any>>, %arg1: memref<2x8x256xf32, #tpu.memory_space<any>>, %arg2: memref<2x!tpu.dma_semaphore, #tpu.memory_space<semaphore_mem>>) attributes {dimension_semantics = [], scalar_prefetch = 0 : i64, scratch_operands = 1 : i64, tpu.core_type = #tpu.core_type<tc>} {
    %c0_i32 = arith.constant 0 : i32
    %0 = tpu.memref_slice %arg2[%c0_i32] : memref<2x!tpu.dma_semaphore, #tpu.memory_space<semaphore_mem>> -> memref<1x!tpu.dma_semaphore, #tpu.memory_space<semaphore_mem>>
    %1 = tpu.memref_squeeze %0 : memref<1x!tpu.dma_semaphore, #tpu.memory_space<semaphore_mem>> -> memref<!tpu.dma_semaphore, #tpu.memory_space<semaphore_mem>>
    tpu.enqueue_dma source(%arg0 : memref<2x8x256xf32, #tpu.memory_space<any>>) target(%arg1 : memref<2x8x256xf32, #tpu.memory_space<any>>) target_semaphore(%1 : memref<!tpu.dma_semaphore, #tpu.memory_space<semaphore_mem>>)
    %c0_i32_0 = arith.constant 0 : i32
    %2 = tpu.memref_slice %arg2[%c0_i32_0] : memref<2x!tpu.dma_semaphore, #tpu.memory_space<semaphore_mem>> -> memref<1x!tpu.dma_semaphore, #tpu.memory_space<semaphore_mem>>
    %3 = tpu.memref_squeeze %2 : memref<1x!tpu.dma_semaphore, #tpu.memory_space<semaphore_mem>> -> memref<!tpu.dma_semaphore, #tpu.memory_space<semaphore_mem>>
    tpu.wait_dma2 semaphore(%3 : memref<!tpu.dma_semaphore, #tpu.memory_space<semaphore_mem>>) src(%arg0 : memref<2x8x256xf32, #tpu.memory_space<any>>) dst(%arg1 : memref<2x8x256xf32, #tpu.memory_space<any>>)
    return
  }
}

</mosaic_0001>

<bundles_post_ra>
// kernel: tpu_custom_call.1
= control target key start
LH: loop header
LB: loop body
LE: loop exit
PB: predicated region body
PF: predicated region fallthrough
CT: control target
= control target key end

     0   :  { %s44_s6 = smov [#allocation2]   ;;  %s45_s7 = smov [#allocation3]   ;;  %s63_s0 = inlined_call_operand.hbm [shape: f32[2,8,256], index: 0, kind: input, shape index: {}]   ;;  %s64_s1 = inlined_call_operand.hbm [shape: f32[2,8,256], index: 1, kind: output, shape index: {}]  }
   0x1   :  { %s46_s8 = smov 0  }
   0x2   :  { %18 = dma.general %s63_s0, 512, %s64_s1, %s44_s6, %s45_s7, [#allocation4], %s46_s8, 0  }
   0x3   :  { %42 = dma.done.wait [#allocation2], 512 }
   0x4   :  { %43 = vsyncadd [#allocation2], 4294966784 }
   0x5   :  { %24 = vsyncmov [#allocation2] }
   0x8   :  { %s25_s13 = vpop.sfrf %24 }
   0x9   :  { %p37_p0 = scmp.ne.s32.totalorder %s25_s13, 0 }
   0xb   :  { %29 = shalt.err (%p37_p0)  }
   0xc   :  { %31 = vsyncmov [#allocation2 + $0x1] }
   0xf   :  { %s32_s14 = vpop.sfrf %31 }
  0x10   :  { %p38_p1 = scmp.ne.s32.totalorder %s32_s14, 0 }
  0x12   :  { %36 = shalt.err (%p38_p1)  }

</bundles_post_ra>
